<compile_context>
chip_gen: v7x
topology: tpu7x:2x2x1
jax: 0.10.0
libtpu: 0.0.40
codegen_flags: <defaults>
</compile_context>

<pallas_src>
import random

import numpy as np
import jax
import jax.numpy as jnp
from jax.experimental import pallas as pl
from jax.experimental.pallas import tpu as pltpu


def _cdiv(a, b):
    return -(-a // b)


def _round_up(x, m):
    return _cdiv(x, m) * m


def _vmem_budget_bytes():
    """Generation-aware VMEM tile budget (~3/4 of physical, capped at 96 MiB).

    v7x: 64 MiB physical -> 48 MiB budget; v5e/v6e: 128 MiB -> 96 MiB.
    Falls back to the conservative v7x figure if the query is unavailable.
    """
    cap = None
    try:
        cap = getattr(pltpu.get_tpu_info(), "vmem_capacity_bytes", None)
    except Exception:
        cap = None
    if not cap:
        cap = 64 * 1024 * 1024
    return int(min(cap * 3 // 4, 96 * 1024 * 1024))


def _mean_agg_matmul_kernel(mask_ref, emb_ref, rinv_ref, o_ref):
    """One (tm, tn) f32 output tile; in-place accumulation over the K grid axis.

    The output BlockSpec maps every k step to the same (i, j) block, so o_ref
    stays resident in VMEM across the reduction.  The mask is binary (exact in
    bf16); the f32 1/deg row scale is applied once in the epilogue on the
    already-resident tile (VPU slack -> free).
    """

    @pl.when(pl.program_id(2) == 0)
    def _():
        o_ref[...] = jnp.zeros_like(o_ref)

    o_ref[...] += jnp.dot(
        mask_ref[...], emb_ref[...], preferred_element_type=jnp.float32
    )

    @pl.when(pl.program_id(2) == pl.num_programs(2) - 1)
    def _():
        o_ref[...] *= rinv_ref[...]  # (tm, tn) * (tm, 1) broadcast, f32


def _choose_tiles(B, K, D, budget):
    """MXU-shaped, VMEM-filling tiles.  tn is the full feature dim (lane-dense
    output stores, no device-side D padding); tm/tk grow into the budget."""
    B128 = _round_up(max(B, 1), 128)
    K128 = _round_up(max(K, 1), 128)

    # Row tile: as large as possible (<=512) so the K x D emb stream is read
    # from HBM as few times as possible; shrink if the resident f32 output
    # tile would dominate VMEM (very large D).
    tm_cap = 512
    while tm_cap > 128 and 2 * tm_cap * D * 4 > budget // 2:
        tm_cap //= 2
    mc = _cdiv(B128, tm_cap)
    tm = _round_up(_cdiv(B128, mc), 128)
    Bp = tm * mc

    # Lane tile: full feature dim.  If there is only one row block, split the
    # lane axis in two so v7x's second TensorCore gets a parallel block
    # (near-neutral on v5e/v6e which have a single TensorCore).
    if mc == 1 and D >= 256 and D % 256 == 0:
        dc, tn = 2, D // 2
    else:
        dc, tn = 1, D

    # K tile: fill the remaining (double-buffered) VMEM budget, cap 8192,
    # with balanced k splits so padding past round_up(K, 128) stays small.
    rem = budget - 2 * tm * D * 4
    tk_cap = (rem // (4 * (tm + D))) // 128 * 128
    tk_cap = max(128, min(8192, tk_cap))
    kc = _cdiv(K128, tk_cap)
    tk = _round_up(_cdiv(K128, kc), 128)
    Kp = tk * kc

    return tm, tn, tk, Bp, Kp, (Bp // tm, dc, Kp // tk)


# Below this padded workload (Bp*Kp*Dp elements of matmul), the fixed
# pallas_call / pipeline cost and padding FLOPs dominate -> plain XLA dot wins.
_SMALL_PROBLEM_ELEMS = 1 << 22


def pallas_mean_aggregate(features, col_idx, r_inv, unique_idx):
    """to_feats[i] = (1/deg_i) * sum_{j in neigh(i)} features[unique_idx[j]].

    features : (N, D) float array (device)
    col_idx  : list of B lists of column indices into the unique-node axis
    r_inv    : (B,) float32 numpy, 1/deg (0 where deg == 0)
    unique_idx : (K,) int32 numpy, 0-based feature rows of the unique nodes
    """
    B = len(col_idx)
    K = int(unique_idx.shape[0])
    _, D = features.shape

    padded_work = _round_up(B, 128) * _round_up(K, 128) * _round_up(D, 128)
    if padded_work <= _SMALL_PROBLEM_ELEMS:
        # Small-problem bypass: XLA's fused gather + dot beats the kernel here.
        mask = np.zeros((B, K), np.float32)
        for i, cols in enumerate(col_idx):
            mask[i, cols] = 1.0
        emb = jnp.take(features, jnp.asarray(unique_idx), axis=0)
        out = jnp.dot(jnp.asarray(mask), emb, preferred_element_type=jnp.float32)
        return out * jnp.asarray(r_inv)[:, None]

    budget = _vmem_budget_bytes()
    tm, tn, tk, Bp, Kp, grid = _choose_tiles(B, K, D, budget)

    # Binary (0/1) mask built already padded and in bf16 on the host: values
    # are exact in bf16, there is no device-side pad/cast pass, and the H2D
    # transfer is half the bytes of the previous f32 mask.
    mask_np = np.zeros((Bp, Kp), np.float32)
    for i, cols in enumerate(col_idx):
        mask_np[i, cols] = 1.0
    mask_p = jnp.asarray(mask_np.astype(jnp.bfloat16))

    # 1/deg stays in f32 (most 1/deg are not representable in bf16) and is
    # applied in the kernel epilogue.
    rinv_np = np.zeros((Bp, 1), np.float32)
    rinv_np[:B, 0] = r_inv
    rinv_p = jnp.asarray(rinv_np)

    # Gather the unique-node features with an index vector padded to Kp
    # (pad index 0; the zero mask columns nullify those rows).  The bf16 cast
    # fuses into the gather, so the dominant K x D operand is written to HBM
    # exactly once, in bf16.
    idx_np = np.zeros((Kp,), np.int32)
    idx_np[:K] = unique_idx
    emb_p = jnp.take(features, jnp.asarray(idx_np), axis=0).astype(jnp.bfloat16)

    cost = pl.CostEstimate(
        flops=2 * Bp * Kp * D,
        transcendentals=0,
        bytes_accessed=Bp * Kp * 2 + Kp * D * 2 + Bp * D * 4 + Bp * 4,
    )

    out_p = pl.pallas_call(
        _mean_agg_matmul_kernel,
        out_shape=jax.ShapeDtypeStruct((Bp, D), jnp.float32),
        grid_spec=pltpu.PrefetchScalarGridSpec(
            num_scalar_prefetch=0,
            grid=grid,  # (row blocks, lane blocks, K blocks) -- reduction last
            in_specs=[
                pl.BlockSpec((tm, tk), lambda i, j, k: (i, k)),   # mask (bf16)
                pl.BlockSpec((tk, tn), lambda i, j, k: (k, j)),   # emb  (bf16)
                pl.BlockSpec((tm, 1), lambda i, j, k: (i, 0)),    # 1/deg (f32)
            ],
            out_specs=pl.BlockSpec((tm, tn), lambda i, j, k: (i, j)),
        ),
        compiler_params=pltpu.CompilerParams(
            dimension_semantics=("parallel", "parallel", "arbitrary"),
            vmem_limit_bytes=int(budget),
        ),
        cost_estimate=cost,
    )(mask_p, emb_p, rinv_p)
    return out_p[:B, :]


class MeanAggregator:
    """JAX/Pallas port of the PyTorch MeanAggregator forward pass."""

    def __init__(self, gcn=False):
        self.gcn = gcn

    def forward(self, features, nodes, to_neighs, num_sample=10,
                return_intermediates=False):
        _set = set
        # --- neighbor sampling (host-side glue, mirrors the torch module) ---
        # TODO(synk): python `random.sample` over sets has no Pallas equivalent;
        # sampling stays on the host (sorted for determinism).
        if num_sample is not None:
            _sample = random.sample
            samp_neighs = [
                _set(_sample(sorted(to_neigh), num_sample))
                if len(to_neigh) >= num_sample
                else to_neigh
                for to_neigh in to_neighs
            ]
        else:
            samp_neighs = to_neighs
        if self.gcn:
            samp_neighs = [
                samp_neigh | {nodes[i]} for i, samp_neigh in enumerate(samp_neighs)
            ]

        # --- unique sampled neighbors and per-row column indices -------------
        unique_nodes_list = list(set.union(*samp_neighs))
        assert min(unique_nodes_list) >= 1, (
            "node ids must be 1-based; id 0 would wrap to the last feature row"
        )
        unique_nodes = {n: i for i, n in enumerate(unique_nodes_list)}
        B = len(samp_neighs)
        K = len(unique_nodes_list)

        col_idx = [[unique_nodes[n] for n in samp_neigh] for samp_neigh in samp_neighs]
        deg = np.array([len(c) for c in col_idx], dtype=np.float32)
        r_inv = np.where(deg > 0.0, 1.0 / np.maximum(deg, 1.0), 0.0).astype(np.float32)

        # ids are 1-based in the reference module (unique_nodes_list - 1)
        unique_idx = np.asarray(unique_nodes_list, dtype=np.int32) - 1

        # --- hot path: SparseMM.forward == mask @ embed_matrix, on TPU -------
        to_feats = pallas_mean_aggregate(features, col_idx, r_inv, unique_idx)

        if return_intermediates:
            # f32 reference intermediates (normalized dense mask + f32 gather)
            mask = np.zeros((B, K), dtype=np.float32)
            for i, cols in enumerate(col_idx):
                mask[i, cols] = 1.0
            mask = mask * r_inv[:, None]
            embed_matrix = jnp.take(features, jnp.asarray(unique_idx), axis=0)
            return to_feats, mask, embed_matrix
        return to_feats


if __name__ == "__main__":
    random.seed(0)
    key = jax.random.PRNGKey(0)
    agg = MeanAggregator(gcn=False)

    # ---- Case A: tiny shapes (exercises the small-problem XLA bypass) ------
    N_A, D_A, B_A, S_A = 64, 32, 8, 5
    key, k1 = jax.random.split(key)
    feats_a = jax.random.normal(k1, (N_A, D_A), dtype=jnp.float32)
    rng = random.Random(0)
    nodes_a = list(range(1, B_A + 1))
    to_neighs_a = []
    for n in nodes_a:
        deg = rng.randint(3, 12)
        neigh = set(rng.sample(range(1, N_A + 1), deg))
        neigh.discard(n)
        if not neigh:
            neigh = {(n % N_A) + 1}
        to_neighs_a.append(neigh)

    out_a, mask_a, emb_a = agg.forward(
        feats_a, nodes_a, to_neighs_a, S_A, return_intermediates=True
    )
    out_a = jax.block_until_ready(out_a)
    ref_a = mask_a @ np.asarray(emb_a)
    np.testing.assert_allclose(np.asarray(out_a), ref_a, rtol=1e-4, atol=1e-5)
    assert out_a.shape == (B_A, D_A)
    assert out_a.dtype == jnp.float32

    # ---- Case B: larger shapes (exercises the Pallas matmul kernel) --------
    N_B, D_B, B_B, S_B = 2048, 128, 128, 10
    key, k2 = jax.random.split(key)
    feats_b = jax.random.normal(k2, (N_B, D_B), dtype=jnp.float32)
    rng = random.Random(1)
    nodes_b = list(range(1, B_B + 1))
    to_neighs_b = []
    for n in nodes_b:
        neigh = set(rng.sample(range(1, N_B + 1), 16))
        neigh.discard(n)
        to_neighs_b.append(neigh)

    out_b, mask_b, emb_b = agg.forward(
        feats_b, nodes_b, to_neighs_b, S_B, return_intermediates=True
    )
    out_b = jax.block_until_ready(out_b)
    ref_b = mask_b @ np.asarray(emb_b)
    # bf16 streamed operands with f32 accumulation and f32 1/deg epilogue:
    # ~bf16-level (0.4%) relative feature precision, unbiased mean.
    np.testing.assert_allclose(np.asarray(out_b), ref_b, rtol=1e-2, atol=1e-2)
    assert out_b.shape == (B_B, D_B)
    assert out_b.dtype == jnp.float32

    print("KERNEL_OK")
</pallas_src>

<mosaic_0001>
module attributes {stable_mosaic.version = 11 : i64} {
  func.func @_mean_agg_matmul_kernel(%arg0: i32, %arg1: i32, %arg2: i32, %arg3: memref<128x1024xbf16, #tpu.memory_space<vmem>>, %arg4: memref<1024x128xbf16, #tpu.memory_space<vmem>>, %arg5: memref<128x1xf32, #tpu.memory_space<vmem>>, %arg6: memref<128x128xf32, #tpu.memory_space<vmem>>) attributes {dimension_semantics = [#tpu.dimension_semantics<parallel>, #tpu.dimension_semantics<parallel>, #tpu.dimension_semantics<arbitrary>], iteration_bounds = array<i64: 1, 1, 1>, scalar_prefetch = 0 : i64, scratch_operands = 0 : i64, tpu.core_type = #tpu.core_type<tc>, window_params = [{transform_indices = @transform_0, window_bounds = array<i64: 128, 1024>}, {transform_indices = @transform_1, window_bounds = array<i64: 1024, 128>}, {transform_indices = @transform_2, window_bounds = array<i64: 128, 1>}, {transform_indices = @transform_3, window_bounds = array<i64: 128, 128>}]} {
    %c0_i32 = arith.constant 0 : i32
    %0 = arith.cmpi eq, %arg2, %c0_i32 : i32
    %1 = arith.extui %0 : i1 to i32
    %c0_i32_0 = arith.constant 0 : i32
    %2 = arith.cmpi ne, %1, %c0_i32_0 : i32
    scf.if %2 {
      %cst_10 = arith.constant 0.000000e+00 : f32
      %12 = vector.broadcast %cst_10 : f32 to vector<128x128xf32>
      %c0_11 = arith.constant 0 : index
      %c0_12 = arith.constant 0 : index
      %13 = vector.load %arg6[%c0_11, %c0_12] : memref<128x128xf32, #tpu.memory_space<vmem>>, vector<128x128xf32>
      tpu.vector_store %arg6[%c0_11, %c0_12], %12 {strides = array<i32>} : memref<128x128xf32, #tpu.memory_space<vmem>>, vector<128x128xf32>,
    } else {
    }
    %c0 = arith.constant 0 : index
    %c0_1 = arith.constant 0 : index
    %3 = vector.load %arg6[%c0, %c0_1] : memref<128x128xf32, #tpu.memory_space<vmem>>, vector<128x128xf32>
    %c0_2 = arith.constant 0 : index
    %c0_3 = arith.constant 0 : index
    %4 = vector.load %arg3[%c0_2, %c0_3] : memref<128x1024xbf16, #tpu.memory_space<vmem>>, vector<128x1024xbf16>
    %c0_4 = arith.constant 0 : index
    %c0_5 = arith.constant 0 : index
    %5 = vector.load %arg4[%c0_4, %c0_5] : memref<1024x128xbf16, #tpu.memory_space<vmem>>, vector<1024x128xbf16>
    %cst = arith.constant dense<0.000000e+00> : vector<128x128xf32>
    %6 = tpu.matmul %4, %5, %cst {dimension_numbers = #tpu.dot_dimension_numbers<[1], [0], [0], [1], [0, 0, 1, 1], [], []>} : vector<128x1024xbf16>, vector<1024x128xbf16>, vector<128x128xf32> -> vector<128x128xf32>
    %7 = arith.addf %3, %6 : vector<128x128xf32>
    %c0_6 = arith.constant 0 : index
    %c0_7 = arith.constant 0 : index
    %8 = vector.load %arg6[%c0_6, %c0_7] : memref<128x128xf32, #tpu.memory_space<vmem>>, vector<128x128xf32>
    tpu.vector_store %arg6[%c0_6, %c0_7], %7 {strides = array<i32>} : memref<128x128xf32, #tpu.memory_space<vmem>>, vector<128x128xf32>,
    %c0_i32_8 = arith.constant 0 : i32
    %9 = arith.cmpi eq, %arg2, %c0_i32_8 : i32
    %10 = arith.extui %9 : i1 to i32
    %c0_i32_9 = arith.constant 0 : i32
    %11 = arith.cmpi ne, %10, %c0_i32_9 : i32
    scf.if %11 {
      %c0_10 = arith.constant 0 : index
      %c0_11 = arith.constant 0 : index
      %12 = vector.load %arg6[%c0_10, %c0_11] : memref<128x128xf32, #tpu.memory_space<vmem>>, vector<128x128xf32>
      %c0_12 = arith.constant 0 : index
      %c0_13 = arith.constant 0 : index
      %13 = vector.load %arg5[%c0_12, %c0_13] : memref<128x1xf32, #tpu.memory_space<vmem>>, vector<128x1xf32>
      %14 = vector.broadcast %13 : vector<128x1xf32> to vector<128x128xf32>
      %15 = arith.mulf %12, %14 : vector<128x128xf32>
      %c0_14 = arith.constant 0 : index
      %c0_15 = arith.constant 0 : index
      %16 = vector.load %arg6[%c0_14, %c0_15] : memref<128x128xf32, #tpu.memory_space<vmem>>, vector<128x128xf32>
      tpu.vector_store %arg6[%c0_14, %c0_15], %15 {strides = array<i32>} : memref<128x128xf32, #tpu.memory_space<vmem>>, vector<128x128xf32>,
    } else {
    }
    return
  }
  func.func @transform_0(%arg0: i32, %arg1: i32, %arg2: i32) -> (i32, i32) {
    %c0_i32 = arith.constant 0 : i32
    return %arg0, %arg2 : i32, i32
  }
  func.func @transform_1(%arg0: i32, %arg1: i32, %arg2: i32) -> (i32, i32) {
    %c0_i32 = arith.constant 0 : i32
    return %arg2, %arg1 : i32, i32
  }
  func.func @transform_2(%arg0: i32, %arg1: i32, %arg2: i32) -> (i32, i32) {
    %c0_i32 = arith.constant 0 : i32
    %c0_i32_0 = arith.constant 0 : i32
    return %arg0, %c0_i32 : i32, i32
  }
  func.func @transform_3(%arg0: i32, %arg1: i32, %arg2: i32) -> (i32, i32) {
    %c0_i32 = arith.constant 0 : i32
    return %arg0, %arg1 : i32, i32
  }
}

</mosaic_0001>

<bundles_post_ra>
// kernel: tpu_custom_call.1
= control target key start
LH: loop header
LB: loop body
LE: loop exit
PB: predicated region body
PF: predicated region fallthrough
CT: control target
= control target key end

     0   :  { %8 = vsyncpa [#allocation3], 0  ;;  %s2256_s0 = inlined_call_operand.hbm [shape: bf16[128,1024], index: 0, kind: input, shape index: {}]   ;;  %s2257_s1 = inlined_call_operand.hbm [shape: bf16[1024,128], index: 1, kind: input, shape index: {}]   ;;  %s2258_s2 = inlined_call_operand.vmem [shape: f32[128,1], index: 2, kind: input, shape index: {}]   ;;  %s2259_s3 = inlined_call_operand.hbm [shape: f32[128,128], index: 3, kind: output, shape index: {}]  }
   0x1   :  { %9 = vsyncpa [#allocation6], 0 }
   0x2   :  { %10 = vsyncpa [#allocation4], 0  ;;  %s2094_s12 = smov [#allocation2]   ;;  %s2022_s16 = scalar_lea.hbm %s2256_s0, 8192 }
   0x3   :  { %s16_s13 = sshll.u32 %s2094_s12, 4  ;;  %p2023_p0 = scmp.ne.s32.totalorder %s2256_s0, %s2022_s16  ;;  %s17_s13 = int_to_ptr.vmem [resolvable:$true] %s16_s13 }
   0x4   :  { %p2026_p1 = scmp.lt.u32.totalorder %s2022_s16, %s2256_s0 }
   0x6   :  { %p2028_p2 = pnand %p2026_p1, %p2023_p0 }
   0x8   :  { %2031 = shalt.err (!%p2028_p2)
}
   0x9   :  { %s2032_s21 = scalar_lea.vmem %s17_s13, 8192  ;;  %p2037_p4 = scmp.lt.s32.totalorder %s17_s13, %s17_s13 }
   0xa   :  { %p2033_p3 = scmp.ne.s32.totalorder %s17_s13, %s2032_s21  ;;  %p2038_p5 = scmp.lt.s32.totalorder %s2032_s21, %s2032_s21 }
   0xc   :  { %p2039_p6 = por %p2038_p5, %p2037_p4 }
   0xe   :  { %p2040_p7 = pnand %p2039_p6, %p2033_p3 }
  0x10   :  { %2043 = shalt.err (!%p2040_p7)
}
  0x11   :  { %s2095_s22 = smov 512   ;;  %s2096_s23 = smov 32  }
  0x12   :  { %22 = dma.hbm_to_vmem [thread:$0]  %s2256_s0, 8192, %s17_s13, [#allocation3], %s2095_s22, %s2095_s22, %s2096_s23  }
  0x13   :  { %s2097_s26 = smov [#allocation5]   ;;  %s2044_s30 = scalar_lea.hbm %s2257_s1, 8192 }
  0x14   :  { %s28_s27 = sshll.u32 %s2097_s26, 4  ;;  %p2045_p8 = scmp.ne.s32.totalorder %s2257_s1, %s2044_s30  ;;  %s29_s27 = int_to_ptr.vmem [resolvable:$true] %s28_s27 }
  0x15   :  { %p2048_p9 = scmp.lt.u32.totalorder %s2044_s30, %s2257_s1 }
  0x17   :  { %p2050_p10 = pnand %p2048_p9, %p2045_p8 }
  0x19   :  { %2053 = shalt.err (!%p2050_p10)
}
  0x1a   :  { %s2054_s8 = scalar_lea.vmem %s29_s27, 8192  ;;  %p2059_p12 = scmp.lt.s32.totalorder %s29_s27, %s29_s27 }
  0x1b   :  { %p2055_p11 = scmp.ne.s32.totalorder %s29_s27, %s2054_s8  ;;  %p2060_p13 = scmp.lt.s32.totalorder %s2054_s8, %s2054_s8 }
  0x1d   :  { %p2061_p0 = por %p2060_p13, %p2059_p12 }
  0x1f   :  { %p2062_p1 = pnand %p2061_p0, %p2055_p11 }
  0x21   :  { %2065 = shalt.err (!%p2062_p1)
}
  0x22   :  { %s2098_s0 = smov 64   ;;  %s2099_s9 = smov 4  }
  0x23   :  { %34 = dma.hbm_to_vmem [thread:$0]  %s2257_s1, 8192, %s29_s27, [#allocation6], %s2098_s0, %s2098_s0, %s2099_s9  }
  0x24   :  { %2088 = dma.done.wait [#allocation3], 8192  }
  0x25   :  { %2089 = vsyncadd [#allocation3], 4294959104 }
  0x26   :  { %2090 = dma.done.wait [#allocation6], 8192  }
  0x27   :  { %2091 = vsyncadd [#allocation6], 4294959104  ;;  %v1958_v0 = vld [vmem:[#allocation5 + $0x40] sm:$0xff]   ;;  %v1962_v4 = vld [vmem:[#allocation5 + $0x48] sm:$0xff]   ;;  %v2100_v31 = vmov 0  }
  0x28   :  { %v1959_v1 = vld [vmem:[#allocation5 + $0xc0] sm:$0xff]   ;;  %1689 = vmatprep.subr.bf16.mxu0 %v1958_v0  ;;  %v1963_v5 = vld [vmem:[#allocation5 + $0xc8] sm:$0xff]   ;;  %v1966_v8 = vld [vmem:[#allocation5 + $0x50] sm:$0xff]   ;;  %1956 = vset.pattern.permute.xlu0 %v2100_v31 }
  0x29   :  { %v1960_v2 = vld [vmem:[#allocation5] sm:$0xff]   ;;  %1753 = vmatprep.subr.bf16.mxu1 %v1959_v1  ;;  %v1964_v6 = vld [vmem:[#allocation5 + $0x8] sm:$0xff]   ;;  %v1967_v9 = vld [vmem:[#allocation5 + $0xd0] sm:$0xff]   ;;  %1957 = vset.pattern.permute.xlu1 %v2100_v31 }
  0x2a   :  { %v1961_v3 = vld [vmem:[#allocation5 + $0x80] sm:$0xff]   ;;  %1690 = vmatpush3.bf16.msra.mxu0 %v1960_v2  ;;  %v1965_v7 = vld [vmem:[#allocation5 + $0x88] sm:$0xff]   ;;  %v1968_v10 = vld [vmem:[#allocation5 + $0x10] sm:$0xff]  }
  0x2b   :  { %1754 = vmatpush3.bf16.msra.mxu1 %v1961_v3  ;;  %1691 = vmatprep.subr.bf16.mxu0 %v1962_v4  ;;  %v1969_v11 = vld [vmem:[#allocation5 + $0x90] sm:$0xff]   ;;  %v1970_v12 = vld [vmem:[#allocation5 + $0x58] sm:$0xff]   ;;  %v1974_v16 = vld [vmem:[#allocation5 + $0x60] sm:$0xff]  }
  0x2c   :  { %1755 = vmatprep.subr.bf16.mxu1 %v1963_v5  ;;  %v1971_v13 = vld [vmem:[#allocation5 + $0xd8] sm:$0xff]   ;;  %v1975_v17 = vld [vmem:[#allocation5 + $0xe0] sm:$0xff]   ;;  %v1978_v20 = vld [vmem:[#allocation5 + $0x68] sm:$0xff]  }
  0x2d   :  { %v1972_v14 = vld [vmem:[#allocation5 + $0x18] sm:$0xff]   ;;  %v1976_v18 = vld [vmem:[#allocation5 + $0x20] sm:$0xff]   ;;  %v1979_v21 = vld [vmem:[#allocation5 + $0xe8] sm:$0xff]  }
  0x2e   :  { %1692 = vmatpush3.bf16.msra.mxu0 %v1964_v6  ;;  %v1973_v15 = vld [vmem:[#allocation5 + $0x98] sm:$0xff]   ;;  %v1977_v19 = vld [vmem:[#allocation5 + $0xa0] sm:$0xff]   ;;  %v1980_v22 = vld [vmem:[#allocation5 + $0x28] sm:$0xff]  }
  0x2f   :  { %1756 = vmatpush3.bf16.msra.mxu1 %v1965_v7  ;;  %1693 = vmatprep.subr.bf16.mxu0 %v1966_v8  ;;  %v1981_v23 = vld [vmem:[#allocation5 + $0xa8] sm:$0xff]   ;;  %v1982_v24 = vld [vmem:[#allocation5 + $0x70] sm:$0xff]   ;;  %v1986_v28 = vld [vmem:[#allocation5 + $0x78] sm:$0xff]  }
  0x30   :  { %1757 = vmatprep.subr.bf16.mxu1 %v1967_v9  ;;  %v1983_v25 = vld [vmem:[#allocation5 + $0xf0] sm:$0xff]   ;;  %v1987_v29 = vld [vmem:[#allocation5 + $0xf8] sm:$0xff]   ;;  %v80_v33 = vld [vmem:[#allocation2] sm:$0xff] }
  0x31   :  { %v1984_v26 = vld [vmem:[#allocation5 + $0x30] sm:$0xff]   ;;  %v1988_v30 = vld [vmem:[#allocation5 + $0x38] sm:$0xff]   ;;  %v84_v34 = vld [vmem:[#allocation2 + $0x20] sm:$0xff] }
  0x32   :  { %1694 = vmatpush3.bf16.msra.mxu0 %v1968_v10  ;;  %v1985_v27 = vld [vmem:[#allocation5 + $0xb0] sm:$0xff]   ;;  %v1989_v32 = vld [vmem:[#allocation5 + $0xb8] sm:$0xff]   ;;  %v81_v35 = vld [vmem:[#allocation2 + $0x8] sm:$0xff]  ;;  %v1561_v36 = vcombine.low %v80_v33, %v84_v34  ;;  %v1562_v37 = vcombine.high %v80_v33, %v84_v34 }
  0x33   :  { %1758 = vmatpush3.bf16.msra.mxu1 %v1969_v11  ;;  %1695 = vmatprep.subr.bf16.mxu0 %v1970_v12  ;;  %v85_v38 = vld [vmem:[#allocation2 + $0x28] sm:$0xff]  ;;  %v1990_v41 = vld [vmem:[#allocation5 + $0x140] sm:$0xff]   ;;  %v1998_v63 = vld [vmem:[#allocation5 + $0x150] sm:$0xff]  }
  0x34   :  { %1759 = vmatprep.subr.bf16.mxu1 %v1971_v13  ;;  %v1563_v39 = vcombine.low %v81_v35, %v85_v38  ;;  %v1564_v40 = vcombine.high %v81_v35, %v85_v38  ;;  %1008 = vmatprep.mubr.bf16.mxu0 %v1562_v37  ;;  %v1991_v42 = vld [vmem:[#allocation5 + $0x100] sm:$0xff]   ;;  %v89_v48 = vld [vmem:[#allocation2 + $0x48] sm:$0xff]  ;;  %v1999_v0 = vld [vmem:[#allocation5 + $0x110] sm:$0xff]  }
  0x35   :  { %v1992_v43 = vld [vmem:[#allocation5 + $0x1c0] sm:$0xff]   ;;  %v93_v49 = vld [vmem:[#allocation2 + $0x68] sm:$0xff]  ;;  %v2000_v1 = vld [vmem:[#allocation5 + $0x1d0] sm:$0xff]  }
  0x36   :  { %1696 = vmatpush3.bf16.msra.mxu0 %v1972_v14  ;;  %1105 = vmatprep.mubr.bf16.mxu1 %v1564_v40  ;;  %v1993_v44 = vld [vmem:[#allocation5 + $0x180] sm:$0xff]   ;;  %v1572_v50 = vcombine.high %v89_v48, %v93_v49  ;;  %v1994_v51 = vld [vmem:[#allocation5 + $0x148] sm:$0xff]   ;;  %v1571_v54 = vcombine.low %v89_v48, %v93_v49  ;;  %v2001_v2 = vld [vmem:[#allocation5 + $0x190] sm:$0xff]  }
  0x37   :  { %1760 = vmatpush3.bf16.msra.mxu1 %v1973_v15  ;;  %1697 = vmatprep.subr.bf16.mxu0 %v1974_v16  ;;  %v88_v45 = vld [vmem:[#allocation2 + $0x40] sm:$0xff]  ;;  %v1995_v53 = vld [vmem:[#allocation5 + $0x108] sm:$0xff]   ;;  %v2002_v11 = vld [vmem:[#allocation5 + $0x158] sm:$0xff]  }
  0x38   :  { %1761 = vmatprep.subr.bf16.mxu1 %v1975_v17  ;;  %v92_v46 = vld [vmem:[#allocation2 + $0x60] sm:$0xff]  ;;  %v1996_v55 = vld [vmem:[#allocation5 + $0x1c8] sm:$0xff]   ;;  %v2003_v12 = vld [vmem:[#allocation5 + $0x118] sm:$0xff]  }
  0x39   :  { %v1570_v47 = vcombine.high %v88_v45, %v92_v46  ;;  %v1569_v52 = vcombine.low %v88_v45, %v92_v46  ;;  %v1997_v56 = vld [vmem:[#allocation5 + $0x188] sm:$0xff]   ;;  %v96_v57 = vld [vmem:[#allocation2 + $0x80] sm:$0xff]  ;;  %v2004_v13 = vld [vmem:[#allocation5 + $0x1d8] sm:$0xff]  }
  0x3a   :  { %1698 = vmatpush3.bf16.msra.mxu0 %v1976_v18  ;;  %v100_v58 = vld [vmem:[#allocation2 + $0xa0] sm:$0xff]  ;;  %v97_v59 = vld [vmem:[#allocation2 + $0x88] sm:$0xff]  ;;  %v2005_v14 = vld [vmem:[#allocation5 + $0x198] sm:$0xff]  }
  0x3b   :  { %1762 = vmatpush3.bf16.msra.mxu1 %v1977_v19  ;;  %1699 = vmatprep.subr.bf16.mxu0 %v1978_v20  ;;  %v101_v60 = vld [vmem:[#allocation2 + $0xa8] sm:$0xff]  ;;  %v1578_v61 = vcombine.high %v96_v57, %v100_v58  ;;  %v1577_v3 = vcombine.low %v96_v57, %v100_v58  ;;  %v104_v4 = vld [vmem:[#allocation2 + $0xc0] sm:$0xff]  ;;  %v2015_v40 = vld [vmem:[#allocation5 + $0x130] sm:$0xff]  }
  0x3c   :  { %1763 = vmatprep.subr.bf16.mxu1 %v1979_v21  ;;  %v1580_v62 = vcombine.high %v97_v59, %v101_v60  ;;  %v108_v5 = vld [vmem:[#allocation2 + $0xe0] sm:$0xff]  ;;  %v105_v6 = vld [vmem:[#allocation2 + $0xc8] sm:$0xff]  ;;  %v1579_v7 = vcombine.low %v97_v59, %v101_v60  ;;  %v2019_v49 = vld [vmem:[#allocation5 + $0x138] sm:$0xff]  }
  0x3d   :  { %v1586_v8 = vcombine.high %v104_v4, %v108_v5  ;;  %v109_v9 = vld [vmem:[#allocation2 + $0xe8] sm:$0xff]  ;;  %v112_v15 = vld [vmem:[#allocation2 + $0x100] sm:$0xff]  ;;  %v1585_v20 = vcombine.low %v104_v4, %v108_v5  ;;  %v87_v4 = vld [vmem:[#allocation2 + $0x38] sm:$0xff] }
  0x3e   :  { %1700 = vmatpush3.bf16.msra.mxu0 %v1980_v22  ;;  %v1588_v10 = vcombine.high %v105_v6, %v109_v9  ;;  %v116_v16 = vld [vmem:[#allocation2 + $0x120] sm:$0xff]  ;;  %v113_v17 = vld [vmem:[#allocation2 + $0x108] sm:$0xff]  ;;  %v1587_v22 = vcombine.low %v105_v6, %v109_v9 }
  0x3f   :  { %1764 = vmatpush3.bf16.msra.mxu1 %v1981_v23  ;;  %1701 = vmatprep.subr.bf16.mxu0 %v1982_v24  ;;  %v117_v18 = vld [vmem:[#allocation2 + $0x128] sm:$0xff]  ;;  %v2006_v19 = vld [vmem:[#allocation5 + $0x160] sm:$0xff]   ;;  %v1594_v23 = vcombine.high %v112_v15, %v116_v16  ;;  %v1593_v35 = vcombine.low %v112_v15, %v116_v16  ;;  %v91_v15 = vld [vmem:[#allocation2 + $0x58] sm:$0xff] }
  0x40   :  { %1765 = vmatprep.subr.bf16.mxu1 %v1983_v25  ;;  %v2007_v21 = vld [vmem:[#allocation5 + $0x120] sm:$0xff]   ;;  %v1596_v25 = vcombine.high %v113_v17, %v117_v18  ;;  %v125_v31 = vld [vmem:[#allocation2 + $0x168] sm:$0xff]  ;;  %v95_v16 = vld [vmem:[#allocation2 + $0x78] sm:$0xff] }
  0x41   :  { %v2008_v24 = vld [vmem:[#allocation5 + $0x1e0] sm:$0xff]   ;;  %v2012_v33 = vld [vmem:[#allocation5 + $0x1e8] sm:$0xff]  }
  0x42   :  { %1702 = vmatpush3.bf16.msra.mxu0 %v1984_v26  ;;  %v2009_v26 = vld [vmem:[#allocation5 + $0x1a0] sm:$0xff]   ;;  %v2013_v34 = vld [vmem:[#allocation5 + $0x1a8] sm:$0xff]  }
  0x43   :  { %1766 = vmatpush3.bf16.msra.mxu1 %v1985_v27  ;;  %1703 = vmatprep.subr.bf16.mxu0 %v1986_v28  ;;  %v120_v27 = vld [vmem:[#allocation2 + $0x140] sm:$0xff]  ;;  %v129_v45 = vld [vmem:[#allocation2 + $0x188] sm:$0xff] }
  0x44   :  { %1767 = vmatprep.subr.bf16.mxu1 %v1987_v29  ;;  %v124_v28 = vld [vmem:[#allocation2 + $0x160] sm:$0xff]  ;;  %v2010_v29 = vld [vmem:[#allocation5 + $0x168] sm:$0xff]  }
  0x45   :  { %v1602_v37 = vcombine.high %v120_v27, %v124_v28  ;;  %v133_v46 = vld [vmem:[#allocation2 + $0x1a8] sm:$0xff]  ;;  %v1601_v48 = vcombine.low %v120_v27, %v124_v28  ;;  %v99_v27 = vld [vmem:[#allocation2 + $0x98] sm:$0xff] }
  0x46   :  { %1704 = vmatpush3.bf16.msra.mxu0 %v1988_v30  ;;  %v121_v30 = vld [vmem:[#allocation2 + $0x148] sm:$0xff]  ;;  %v1611_v60 = vcombine.low %v129_v45, %v133_v46  ;;  %v103_v28 = vld [vmem:[#allocation2 + $0xb8] sm:$0xff] }
  0x47   :  { %1768 = vmatpush3.bf16.msra.mxu1 %v1989_v32  ;;  %1817 = vmatprep.subr.bf16.mxu0 %v1990_v41  ;;  %v2011_v32 = vld [vmem:[#allocation5 + $0x128] sm:$0xff]   ;;  %v1604_v38 = vcombine.high %v121_v30, %v125_v31  ;;  %v2016_v41 = vld [vmem:[#allocation5 + $0x1f0] sm:$0xff]  }
  0x48   :  { %1881 = vmatprep.subr.bf16.mxu1 %v1992_v43  ;;  %v132_v43 = vld [vmem:[#allocation2 + $0x1a0] sm:$0xff]  ;;  %v137_v57 = vld [vmem:[#allocation2 + $0x1c8] sm:$0xff] }
  0x49   :  { %1009 = vmatmul.mubr.bf16.vlgmr.msra.gmra.mrb[0].mxu0 %v1561_v36  ;;  %v1595_v36 = vcombine.low %v113_v17, %v117_v18  ;;  %v141_v58 = vld [vmem:[#allocation2 + $0x1e8] sm:$0xff]  ;;  %v1421_v17 = vld [vmem:[%s2258_s2 + $0x30] sm:$0xff] }
  0x4a   :  { %1106 = vmatmul.mubr.bf16.vlgmr.msra.gmra.mrb[0].mxu1 %v1563_v39  ;;  %1818 = vmatpush3.bf16.msra.mxu0 %v1991_v42  ;;  %v2014_v39 = vld [vmem:[#allocation5 + $0x170] sm:$0xff]   ;;  %v128_v42 = vld [vmem:[#allocation2 + $0x180] sm:$0xff]  ;;  %v1416_v5 = vld [vmem:[%s2258_s2 + $0x8] sm:$0xff] }
  0x4b   :  { %1882 = vmatpush3.bf16.msra.mxu1 %v1993_v44  ;;  %1016 = vmatprep.mubr.bf16.mxu0 %v1570_v47  ;;  %v2017_v44 = vld [vmem:[#allocation5 + $0x1b0] sm:$0xff]   ;;  %v2018_v47 = vld [vmem:[#allocation5 + $0x178] sm:$0xff]   ;;  %v1609_v59 = vcombine.low %v128_v42, %v132_v43 }
  0x4c   :  { %1113 = vmatprep.mubr.bf16.mxu1 %v1572_v50  ;;  %1819 = vmatprep.subr.bf16.mxu0 %v1994_v51  ;;  %v1603_v50 = vcombine.low %v121_v30, %v125_v31  ;;  %v1610_v51 = vcombine.high %v128_v42, %v132_v43  ;;  %v1426_v31 = vld [vmem:[%s2258_s2 + $0x58] sm:$0xff] }
  0x4d   :  { %1883 = vmatprep.subr.bf16.mxu1 %v1996_v55  ;;  %v136_v55 = vld [vmem:[#allocation2 + $0x1c0] sm:$0xff]  ;;  %v1430_v43 = vld [vmem:[%s2258_s2 + $0x78] sm:$0xff] }
  0x4e   :  { %1820 = vmatpush3.bf16.msra.mxu0 %v1995_v53  ;;  %v1612_v53 = vcombine.high %v129_v45, %v133_v46 }
  0x4f   :  { %1884 = vmatpush3.bf16.msra.mxu1 %v1997_v56  ;;  %1821 = vmatprep.subr.bf16.mxu0 %v1998_v63  ;;  %v140_v56 = vld [vmem:[#allocation2 + $0x1e0] sm:$0xff] }
  0x50   :  { %1885 = vmatprep.subr.bf16.mxu1 %v2000_v1  ;;  %v1415_v63 = vld [vmem:[%s2258_s2] sm:$0xff]  ;;  %v86_v1 = vld [vmem:[#allocation2 + $0x30] sm:$0xff]  ;;  %v1617_v6 = vcombine.low %v136_v55, %v140_v56 }
  0x51   :  { %1017 = vmatmul.mubr.bf16.gmra.mrb[4].mxu0 %v1569_v52  ;;  %v2020_v52 = vld [vmem:[#allocation5 + $0x1f8] sm:$0xff]   ;;  %1433 = vperm.xlu0 %1956, %v1415_v63   ;;  %v130_v63 = vld [vmem:[#allocation2 + $0x190] sm:$0xff] }
  0x52   :  { %1114 = vmatmul.mubr.bf16.gmra.mrb[4].mxu1 %v1571_v54  ;;  %1024 = vmatprep.mubr.bf16.mxu0 %v1578_v61  ;;  %v2021_v54 = vld [vmem:[#allocation5 + $0x1b8] sm:$0xff]   ;;  %v1618_v61 = vcombine.high %v136_v55, %v140_v56  ;;  %v122_v55 = vld [vmem:[#allocation2 + $0x150] sm:$0xff] }
  0x53   :  { %1121 = vmatprep.mubr.bf16.mxu1 %v1580_v62  ;;  %1822 = vmatpush3.bf16.msra.mxu0 %v1999_v0  ;;  %v1620_v62 = vcombine.high %v137_v57, %v141_v58  ;;  %v82_v0 = vld [vmem:[#allocation2 + $0x10] sm:$0xff] }
  0x54   :  { %1886 = vmatpush3.bf16.msra.mxu1 %v2001_v2  ;;  %1823 = vmatprep.subr.bf16.mxu0 %v2002_v11  ;;  %v1417_v2 = vld [vmem:[%s2258_s2 + $0x10] sm:$0xff]  ;;  %v1566_v9 = vcombine.high %v82_v0, %v86_v1  ;;  %v1419_v11 = vld [vmem:[%s2258_s2 + $0x20] sm:$0xff]  ;;  %v1565_v18 = vcombine.low %v82_v0, %v86_v1  ;;  %v131_v1 = vld [vmem:[#allocation2 + $0x198] sm:$0xff] }
  0x55   :  { %1887 = vmatprep.subr.bf16.mxu1 %v2004_v13  ;;  %1443 = vperm.xlu1 %1957, %v1417_v2   ;;  %v90_v13 = vld [vmem:[#allocation2 + $0x50] sm:$0xff]  ;;  %v135_v2 = vld [vmem:[#allocation2 + $0x1b8] sm:$0xff] }
  0x56   :  { %1438 = vperm.xlu0 %1956, %v1416_v5   ;;  %v126_v56 = vld [vmem:[#allocation2 + $0x170] sm:$0xff] }
  0x57   :  { %1824 = vmatpush3.bf16.msra.mxu0 %v2003_v12  ;;  %v1420_v12 = vld [vmem:[%s2258_s2 + $0x28] sm:$0xff]  ;;  %v134_v0 = vld [vmem:[#allocation2 + $0x1b0] sm:$0xff] }
  0x58   :  { %1888 = vmatpush3.bf16.msra.mxu1 %v2005_v14  ;;  %1825 = vmatprep.subr.bf16.mxu0 %v2006_v19  ;;  %v94_v14 = vld [vmem:[#allocation2 + $0x70] sm:$0xff]  ;;  %v1422_v19 = vld [vmem:[%s2258_s2 + $0x38] sm:$0xff]  ;;  %v1614_v5 = vcombine.high %v130_v63, %v134_v0 }
  0x59   :  { %1025 = vmatmul.mubr.bf16.gmra.mrb[8].mxu0 %v1577_v3  ;;  %1889 = vmatprep.subr.bf16.mxu1 %v2008_v24  ;;  %v83_v3 = vld [vmem:[#allocation2 + $0x18] sm:$0xff]  ;;  %v1424_v24 = vld [vmem:[%s2258_s2 + $0x48] sm:$0xff]  ;;  %v1573_v30 = vcombine.low %v90_v13, %v94_v14 }
  0x5a   :  { %1122 = vmatmul.mubr.bf16.gmra.mrb[8].mxu1 %v1579_v7  ;;  %1032 = vmatprep.mubr.bf16.mxu0 %v1586_v8  ;;  %v1418_v7 = vld [vmem:[%s2258_s2 + $0x18] sm:$0xff]  ;;  %v1619_v8 = vcombine.low %v137_v57, %v141_v58 }
  0x5b   :  { %1129 = vmatprep.mubr.bf16.mxu1 %v1588_v10  ;;  %1826 = vmatpush3.bf16.msra.mxu0 %v2007_v21  ;;  %v1568_v10 = vcombine.high %v83_v3, %v87_v4  ;;  %v1574_v21 = vcombine.high %v90_v13, %v94_v14  ;;  %v123_v57 = vld [vmem:[#allocation2 + $0x158] sm:$0xff] }
  0x5c   :  { %1890 = vmatpush3.bf16.msra.mxu1 %v2009_v26  ;;  %1827 = vmatprep.subr.bf16.mxu0 %v2010_v29  ;;  %v102_v26 = vld [vmem:[#allocation2 + $0xb0] sm:$0xff]  ;;  %v127_v58 = vld [vmem:[#allocation2 + $0x178] sm:$0xff] }
  0x5d   :  { %1891 = vmatprep.subr.bf16.mxu1 %v2012_v33  ;;  %1448 = vperm.xlu1 %1957, %v1418_v7   ;;  %v1425_v29 = vld [vmem:[%s2258_s2 + $0x50] sm:$0xff] }
  0x5e   :  { %1453 = vperm.xlu0 %1956, %v1419_v11   ;;  %v138_v7 = vld [vmem:[#allocation2 + $0x1d0] sm:$0xff]  ;;  %v1613_v11 = vcombine.low %v130_v63, %v134_v0 }
  0x5f   :  { %1828 = vmatpush3.bf16.msra.mxu0 %v2011_v32  ;;  %v1575_v32 = vcombine.low %v91_v15, %v95_v16 }
  0x60   :  { %1892 = vmatpush3.bf16.msra.mxu1 %v2013_v34  ;;  %1829 = vmatprep.subr.bf16.mxu0 %v2014_v39  ;;  %v1584_v34 = vcombine.high %v99_v27, %v103_v28  ;;  %v107_v39 = vld [vmem:[#allocation2 + $0xd8] sm:$0xff] }
  0x61   :  { %1033 = vmatmul.mubr.bf16.gmra.mrb[12].mxu0 %v1585_v20  ;;  %1893 = vmatprep.subr.bf16.mxu1 %v2016_v41  ;;  %v1567_v20 = vcombine.low %v83_v3, %v87_v4  ;;  %v1429_v41 = vld [vmem:[%s2258_s2 + $0x70] sm:$0xff]  ;;  %v1605_v3 = vcombine.low %v122_v55, %v126_v56  ;;  %v1607_v4 = vcombine.low %v123_v57, %v127_v58 }
  0x62   :  { %1130 = vmatmul.mubr.bf16.gmra.mrb[12].mxu1 %v1587_v22  ;;  %1040 = vmatprep.mubr.bf16.mxu0 %v1594_v23  ;;  %v1576_v22 = vcombine.high %v91_v15, %v95_v16  ;;  %v1423_v23 = vld [vmem:[%s2258_s2 + $0x40] sm:$0xff] }
  0x63   :  { %1137 = vmatprep.mubr.bf16.mxu1 %v1596_v25  ;;  %1830 = vmatpush3.bf16.msra.mxu0 %v2015_v40  ;;  %v98_v25 = vld [vmem:[#allocation2 + $0x90] sm:$0xff]  ;;  %v111_v40 = vld [vmem:[#allocation2 + $0xf8] sm:$0xff] }
  0x64   :  { %1894 = vmatpush3.bf16.msra.mxu1 %v2017_v44  ;;  %1831 = vmatprep.subr.bf16.mxu0 %v2018_v47  ;;  %v1582_v33 = vcombine.high %v98_v25, %v102_v26  ;;  %v1581_v42 = vcombine.low %v98_v25, %v102_v26  ;;  %v1583_v44 = vcombine.low %v99_v27, %v103_v28  ;;  %v114_v47 = vld [vmem:[#allocation2 + $0x110] sm:$0xff] }
  0x65   :  { %1895 = vmatprep.subr.bf16.mxu1 %v2020_v52  ;;  %1458 = vperm.xlu1 %1957, %v1420_v12   ;;  %v1592_v46 = vcombine.high %v107_v39, %v111_v40  ;;  %v1591_v52 = vcombine.low %v107_v39, %v111_v40  ;;  %v1615_v12 = vcombine.low %v131_v1, %v135_v2 }
  0x66   :  { %1463 = vperm.xlu0 %1956, %v1421_v17  }
  0x67   :  { %1832 = vmatpush3.bf16.msra.mxu0 %v2019_v49  ;;  %v115_v49 = vld [vmem:[#allocation2 + $0x118] sm:$0xff] }
  0x68   :  { %1896 = vmatpush3.bf16.msra.mxu1 %v2021_v54 }
  0x69   :  { %1041 = vmatmul.mubr.bf16.gmra.mrb[16].mxu0 %v1593_v35  ;;  %1468 = vperm.xlu1 %1957, %v1422_v19   ;;  %v1427_v35 = vld [vmem:[%s2258_s2 + $0x60] sm:$0xff] }
  0x6a   :  { %1138 = vmatmul.mubr.bf16.gmra.mrb[16].mxu1 %v1595_v36  ;;  %1048 = vmatprep.mubr.bf16.mxu0 %v1602_v37  ;;  %v1428_v36 = vld [vmem:[%s2258_s2 + $0x68] sm:$0xff]  ;;  %v106_v37 = vld [vmem:[#allocation2 + $0xd0] sm:$0xff]  ;;  %s2101_s2 = smov [#allocation7]  }
  0x6b   :  { %1145 = vmatprep.mubr.bf16.mxu1 %v1604_v38  ;;  %1473 = vperm.xlu0 %1956, %v1423_v23   ;;  %v110_v38 = vld [vmem:[#allocation2 + $0xf0] sm:$0xff]  ;;  %s1548_s14 = sshll.u32 %s2101_s2, 4  ;;  %s1549_s14 = int_to_ptr.vmem [resolvable:$true] %s1548_s14 }
  0x6c   :  { %v1590_v45 = vcombine.high %v106_v37, %v110_v38  ;;  %s2066_s15 = scalar_lea.vmem %s1549_s14, 2048  ;;  %p2071_p3 = scmp.lt.s32.totalorder %s1549_s14, %s1549_s14 }
  0x6d   :  { %1478 = vperm.xlu1 %1957, %v1424_v24   ;;  %p2067_p2 = scmp.ne.s32.totalorder %s1549_s14, %s2066_s15  ;;  %p2072_p4 = scmp.lt.s32.totalorder %s2066_s15, %s2066_s15 }
  0x6f   :  { %1483 = vperm.xlu0 %1956, %v1425_v29   ;;  %p2073_p5 = por %p2072_p4, %p2071_p3 }
  0x71   :  { %1049 = vmatmul.mubr.bf16.gmra.mrb[20].mxu0 %v1601_v48  ;;  %1488 = vperm.xlu1 %1957, %v1426_v31   ;;  %v118_v48 = vld [vmem:[#allocation2 + $0x130] sm:$0xff]  ;;  %p2074_p6 = pnand %p2073_p5, %p2067_p2 }
  0x72   :  { %1146 = vmatmul.mubr.bf16.gmra.mrb[20].mxu1 %v1603_v50  ;;  %1056 = vmatprep.mubr.bf16.mxu0 %v1610_v51  ;;  %v119_v50 = vld [vmem:[#allocation2 + $0x138] sm:$0xff]  ;;  %v1589_v51 = vcombine.low %v106_v37, %v110_v38 }
  0x73   :  { %1153 = vmatprep.mubr.bf16.mxu1 %v1612_v53  ;;  %1493 = vperm.xlu0 %1956, %v1427_v35   ;;  %v1598_v53 = vcombine.high %v114_v47, %v118_v48  ;;  %v1600_v54 = vcombine.high %v115_v49, %v119_v50 }
  0x75   :  { %1498 = vperm.xlu1 %1957, %v1428_v36  }
  0x77   :  { %1503 = vperm.xlu0 %1956, %v1429_v41  }
  0x79   :  { %1057 = vmatmul.mubr.bf16.gmra.mrb[24].mxu0 %v1609_v59  ;;  %1508 = vperm.xlu1 %1957, %v1430_v43   ;;  %v1597_v59 = vcombine.low %v114_v47, %v118_v48 }
  0x7a   :  { %1154 = vmatmul.mubr.bf16.gmra.mrb[24].mxu1 %v1611_v60  ;;  %1064 = vmatprep.mubr.bf16.mxu0 %v1618_v61  ;;  %v1599_v60 = vcombine.low %v115_v49, %v119_v50  ;;  %v1606_v61 = vcombine.high %v122_v55, %v126_v56 }
  0x7b   :  { %1161 = vmatprep.mubr.bf16.mxu1 %v1620_v62  ;;  %v1608_v62 = vcombine.high %v123_v57, %v127_v58 }
  0x81   :  { %1065 = vmatmul.mubr.bf16.gmra.mrb[28].mxu0 %v1617_v6  ;;  %v1616_v6 = vcombine.high %v131_v1, %v135_v2 }
  0x82   :  { %1162 = vmatmul.mubr.bf16.gmra.mrb[28].mxu1 %v1619_v8  ;;  %1202 = vmatprep.mubr.bf16.mxu0 %v1566_v9  ;;  %v142_v8 = vld [vmem:[#allocation2 + $0x1f0] sm:$0xff]  ;;  %v139_v9 = vld [vmem:[#allocation2 + $0x1d8] sm:$0xff] }
  0x83   :  { %1299 = vmatprep.mubr.bf16.mxu1 %v1568_v10  ;;  %v143_v10 = vld [vmem:[#allocation2 + $0x1f8] sm:$0xff]  ;;  %v1622_v13 = vcombine.high %v138_v7, %v142_v8  ;;  %v1621_v15 = vcombine.low %v138_v7, %v142_v8 }
  0x84   :  { %v1624_v14 = vcombine.high %v139_v9, %v143_v10  ;;  %v1623_v16 = vcombine.low %v139_v9, %v143_v10 }
  0x89   :  { %1203 = vmatmul.mubr.bf16.vlgmr.msra.gmra.mrb[32].mxu0 %v1565_v18 }
  0x8a   :  { %1300 = vmatmul.mubr.bf16.vlgmr.msra.gmra.mrb[32].mxu1 %v1567_v20  ;;  %1210 = vmatprep.mubr.bf16.mxu0 %v1574_v21 }
  0x8b   :  { %1307 = vmatprep.mubr.bf16.mxu1 %v1576_v22 }
  0x91   :  { %1211 = vmatmul.mubr.bf16.gmra.mrb[36].mxu0 %v1573_v30 }
  0x92   :  { %1308 = vmatmul.mubr.bf16.gmra.mrb[36].mxu1 %v1575_v32  ;;  %1218 = vmatprep.mubr.bf16.mxu0 %v1582_v33 }
  0x93   :  { %1315 = vmatprep.mubr.bf16.mxu1 %v1584_v34 }
  0x99   :  { %1219 = vmatmul.mubr.bf16.gmra.mrb[40].mxu0 %v1581_v42 }
  0x9a   :  { %1316 = vmatmul.mubr.bf16.gmra.mrb[40].mxu1 %v1583_v44  ;;  %1226 = vmatprep.mubr.bf16.mxu0 %v1590_v45 }
  0x9b   :  { %1323 = vmatprep.mubr.bf16.mxu1 %v1592_v46 }
  0xa1   :  { %1227 = vmatmul.mubr.bf16.gmra.mrb[44].mxu0 %v1589_v51 }
  0xa2   :  { %1324 = vmatmul.mubr.bf16.gmra.mrb[44].mxu1 %v1591_v52  ;;  %1234 = vmatprep.mubr.bf16.mxu0 %v1598_v53 }
  0xa3   :  { %1331 = vmatprep.mubr.bf16.mxu1 %v1600_v54 }
  0xa9   :  { %1235 = vmatmul.mubr.bf16.gmra.mrb[48].mxu0 %v1597_v59 }
  0xaa   :  { %1332 = vmatmul.mubr.bf16.gmra.mrb[48].mxu1 %v1599_v60  ;;  %1242 = vmatprep.mubr.bf16.mxu0 %v1606_v61 }
  0xab   :  { %1339 = vmatprep.mubr.bf16.mxu1 %v1608_v62 }
  0xb1   :  { %1243 = vmatmul.mubr.bf16.gmra.mrb[52].mxu0 %v1605_v3 }
  0xb2   :  { %1340 = vmatmul.mubr.bf16.gmra.mrb[52].mxu1 %v1607_v4  ;;  %1250 = vmatprep.mubr.bf16.mxu0 %v1614_v5 }
  0xb3   :  { %1347 = vmatprep.mubr.bf16.mxu1 %v1616_v6 }
  0xb9   :  { %1251 = vmatmul.mubr.bf16.gmra.mrb[56].mxu0 %v1613_v11 }
  0xba   :  { %1348 = vmatmul.mubr.bf16.gmra.mrb[56].mxu1 %v1615_v12  ;;  %1258 = vmatprep.mubr.bf16.mxu0 %v1622_v13 }
  0xbb   :  { %1355 = vmatprep.mubr.bf16.mxu1 %v1624_v14 }
  0xc1   :  { %1259 = vmatmul.mubr.bf16.gmra.mrb[60].mxu0 %v1621_v15 }
  0xc2   :  { %1356 = vmatmul.mubr.bf16.gmra.mrb[60].mxu1 %v1623_v16 }
 0x11c   :  { %v1705_v17 = vpop.f32.mrb[0].mxu0 }
 0x11d   :  { %v1769_v18 = vpop.f32.mrb[0].mxu1  ;;  %v1706_v19 = vpop.f32.mrb[1].mxu0 }
 0x11e   :  { %v1707_v20 = vadd.f32 %v1706_v19, %v1705_v17  ;;  %v1770_v21 = vpop.f32.mrb[1].mxu1  ;;  %v1708_v22 = vpop.f32.mrb[2].mxu0 }
 0x11f   :  { %v1771_v23 = vadd.f32 %v1770_v21, %v1769_v18  ;;  %v1772_v24 = vpop.f32.mrb[2].mxu1  ;;  %v1709_v25 = vpop.f32.mrb[3].mxu0 }
 0x120   :  { %v1710_v26 = vadd.f32 %v1709_v25, %v1708_v22  ;;  %v1773_v27 = vpop.f32.mrb[3].mxu1 }
 0x121   :  { %v2196_v28 = vadd.f32 %v1771_v23, %v1707_v20  ;;  %v1774_v29 = vadd.f32 %v1773_v27, %v1772_v24 }
 0x123   :  { %v2198_v30 = vadd.f32 %v1774_v29, %v1710_v26 }
 0x124   :  { %v1711_v31 = vpop.f32.mrb[4].mxu0 }
 0x125   :  { %v1775_v32 = vpop.f32.mrb[4].mxu1  ;;  %v1712_v33 = vpop.f32.mrb[5].mxu0 }
 0x126   :  { %v1713_v34 = vadd.f32 %v1712_v33, %v1711_v31  ;;  %v1776_v35 = vpop.f32.mrb[5].mxu1  ;;  %v1714_v36 = vpop.f32.mrb[6].mxu0 }
 0x127   :  { %v1777_v37 = vadd.f32 %v1776_v35, %v1775_v32  ;;  %v1778_v38 = vpop.f32.mrb[6].mxu1  ;;  %v1715_v39 = vpop.f32.mrb[7].mxu0 }
 0x128   :  { %v1716_v40 = vadd.f32 %v1715_v39, %v1714_v36  ;;  %v1779_v41 = vpop.f32.mrb[7].mxu1 }
 0x129   :  { %v2200_v42 = vadd.f32 %v1777_v37, %v1713_v34  ;;  %v1780_v43 = vadd.f32 %v1779_v41, %v1778_v38 }
 0x12b   :  { %v2202_v44 = vadd.f32 %v1780_v43, %v1716_v40 }
 0x12c   :  { %v1717_v45 = vpop.f32.mrb[8].mxu0 }
 0x12d   :  { %v1781_v46 = vpop.f32.mrb[8].mxu1  ;;  %v1718_v47 = vpop.f32.mrb[9].mxu0 }
 0x12e   :  { %v1719_v48 = vadd.f32 %v1718_v47, %v1717_v45  ;;  %v1782_v49 = vpop.f32.mrb[9].mxu1  ;;  %v1720_v50 = vpop.f32.mrb[10].mxu0 }
 0x12f   :  { %v1783_v51 = vadd.f32 %v1782_v49, %v1781_v46  ;;  %v1784_v52 = vpop.f32.mrb[10].mxu1  ;;  %v1721_v53 = vpop.f32.mrb[11].mxu0 }
 0x130   :  { %v1722_v54 = vadd.f32 %v1721_v53, %v1720_v50  ;;  %v1785_v55 = vpop.f32.mrb[11].mxu1 }
 0x131   :  { %v2204_v56 = vadd.f32 %v1783_v51, %v1719_v48  ;;  %v1786_v57 = vadd.f32 %v1785_v55, %v1784_v52 }
 0x133   :  { %v2206_v58 = vadd.f32 %v1786_v57, %v1722_v54 }
 0x134   :  { %v1723_v59 = vpop.f32.mrb[12].mxu0 }
 0x135   :  { %v1787_v60 = vpop.f32.mrb[12].mxu1  ;;  %v1724_v61 = vpop.f32.mrb[13].mxu0 }
 0x136   :  { %v1725_v62 = vadd.f32 %v1724_v61, %v1723_v59  ;;  %v1788_v63 = vpop.f32.mrb[13].mxu1  ;;  %v1726_v0 = vpop.f32.mrb[14].mxu0 }
 0x137   :  { %v1789_v1 = vadd.f32 %v1788_v63, %v1787_v60  ;;  %v1790_v2 = vpop.f32.mrb[14].mxu1  ;;  %v1727_v3 = vpop.f32.mrb[15].mxu0 }
 0x138   :  { %v1728_v4 = vadd.f32 %v1727_v3, %v1726_v0  ;;  %v1791_v5 = vpop.f32.mrb[15].mxu1 }
 0x139   :  { %v2208_v6 = vadd.f32 %v1789_v1, %v1725_v62  ;;  %v1792_v7 = vadd.f32 %v1791_v5, %v1790_v2 }
 0x13b   :  { %v2210_v8 = vadd.f32 %v1792_v7, %v1728_v4 }
 0x13c   :  { %v1729_v9 = vpop.f32.mrb[16].mxu0 }
 0x13d   :  { %v1793_v10 = vpop.f32.mrb[16].mxu1  ;;  %v1730_v11 = vpop.f32.mrb[17].mxu0 }
 0x13e   :  { %v1731_v12 = vadd.f32 %v1730_v11, %v1729_v9  ;;  %v1794_v13 = vpop.f32.mrb[17].mxu1  ;;  %v1732_v14 = vpop.f32.mrb[18].mxu0 }
 0x13f   :  { %v1795_v15 = vadd.f32 %v1794_v13, %v1793_v10  ;;  %v1796_v16 = vpop.f32.mrb[18].mxu1  ;;  %v1733_v17 = vpop.f32.mrb[19].mxu0 }
 0x140   :  { %v1734_v18 = vadd.f32 %v1733_v17, %v1732_v14  ;;  %v1797_v19 = vpop.f32.mrb[19].mxu1  ;;  %v1434_v10 = vpop.permute.xlu0 %1433 }
 0x141   :  { %v2212_v20 = vadd.f32 %v1795_v15, %v1731_v12  ;;  %v1798_v21 = vadd.f32 %v1797_v19, %v1796_v16 }
 0x143   :  { %v2214_v22 = vadd.f32 %v1798_v21, %v1734_v18 }
 0x144   :  { %v1735_v23 = vpop.f32.mrb[20].mxu0 }
 0x145   :  { %v1799_v24 = vpop.f32.mrb[20].mxu1  ;;  %v1736_v25 = vpop.f32.mrb[21].mxu0 }
 0x146   :  { %v1737_v26 = vadd.f32 %v1736_v25, %v1735_v23  ;;  %v1800_v27 = vpop.f32.mrb[21].mxu1  ;;  %v1738_v29 = vpop.f32.mrb[22].mxu0 }
 0x147   :  { %v1801_v31 = vadd.f32 %v1800_v27, %v1799_v24  ;;  %v1802_v32 = vpop.f32.mrb[22].mxu1  ;;  %v1739_v33 = vpop.f32.mrb[23].mxu0 }
 0x148   :  { %v1740_v34 = vadd.f32 %v1739_v33, %v1738_v29  ;;  %v1803_v35 = vpop.f32.mrb[23].mxu1  ;;  %v1444_v27 = vpop.permute.xlu1 %1443 }
 0x149   :  { %v2216_v36 = vadd.f32 %v1801_v31, %v1737_v26  ;;  %v1804_v37 = vadd.f32 %v1803_v35, %v1802_v32  ;;  %v1439_v32 = vpop.permute.xlu0 %1438 }
 0x14b   :  { %v2218_v38 = vadd.f32 %v1804_v37, %v1740_v34 }
 0x14c   :  { %v1741_v39 = vpop.f32.mrb[24].mxu0 }
 0x14d   :  { %v1805_v40 = vpop.f32.mrb[24].mxu1  ;;  %v1742_v41 = vpop.f32.mrb[25].mxu0 }
 0x14e   :  { %v1743_v43 = vadd.f32 %v1742_v41, %v1741_v39  ;;  %v1806_v45 = vpop.f32.mrb[25].mxu1  ;;  %v1744_v46 = vpop.f32.mrb[26].mxu0 }
 0x14f   :  { %v1807_v47 = vadd.f32 %v1806_v45, %v1805_v40  ;;  %v1808_v48 = vpop.f32.mrb[26].mxu1  ;;  %v1745_v49 = vpop.f32.mrb[27].mxu0 }
 0x150   :  { %v1746_v50 = vadd.f32 %v1745_v49, %v1744_v46  ;;  %v1809_v51 = vpop.f32.mrb[27].mxu1 }
 0x151   :  { %v2220_v52 = vadd.f32 %v1807_v47, %v1743_v43  ;;  %v1810_v53 = vadd.f32 %v1809_v51, %v1808_v48 }
 0x153   :  { %v2222_v54 = vadd.f32 %v1810_v53, %v1746_v50 }
 0x154   :  { %v1747_v55 = vpop.f32.mrb[28].mxu0 }
 0x155   :  { %v1811_v57 = vpop.f32.mrb[28].mxu1  ;;  %v1748_v59 = vpop.f32.mrb[29].mxu0 }
 0x156   :  { %v1749_v60 = vadd.f32 %v1748_v59, %v1747_v55  ;;  %v1812_v61 = vpop.f32.mrb[29].mxu1  ;;  %v1750_v62 = vpop.f32.mrb[30].mxu0 }
 0x157   :  { %v1813_v63 = vadd.f32 %v1812_v61, %v1811_v57  ;;  %v1814_v0 = vpop.f32.mrb[30].mxu1  ;;  %v1751_v1 = vpop.f32.mrb[31].mxu0 }
 0x158   :  { %v1752_v2 = vadd.f32 %v1751_v1, %v1750_v62  ;;  %v1815_v3 = vpop.f32.mrb[31].mxu1  ;;  %v1449_v55 = vpop.permute.xlu1 %1448 }
 0x159   :  { %v2224_v4 = vadd.f32 %v1813_v63, %v1749_v60  ;;  %v1816_v5 = vadd.f32 %v1815_v3, %v1814_v0 }
 0x15b   :  { %v2226_v7 = vadd.f32 %v1816_v5, %v1752_v2 }
 0x15c   :  { %v1833_v9 = vpop.f32.mrb[32].mxu0 }
 0x15d   :  { %v1897_v11 = vpop.f32.mrb[32].mxu1  ;;  %v1834_v12 = vpop.f32.mrb[33].mxu0 }
 0x15e   :  { %v1835_v13 = vadd.f32 %v1834_v12, %v1833_v9  ;;  %v1898_v14 = vpop.f32.mrb[33].mxu1  ;;  %v1836_v15 = vpop.f32.mrb[34].mxu0 }
 0x15f   :  { %v1899_v16 = vadd.f32 %v1898_v14, %v1897_v11  ;;  %v1900_v17 = vpop.f32.mrb[34].mxu1  ;;  %v1837_v18 = vpop.f32.mrb[35].mxu0 }
 0x160   :  { %v1205_v19 = vadd.f32 %v1835_v13, %v2196_v28  ;;  %v1838_v21 = vadd.f32 %v1837_v18, %v1836_v15  ;;  %v1901_v23 = vpop.f32.mrb[35].mxu1  ;;  %v1454_v12 = vpop.permute.xlu0 %1453 }
 0x161   :  { %v1902_v24 = vadd.f32 %v1901_v23, %v1900_v17  ;;  %v1459_v15 = vpop.permute.xlu1 %1458 }
 0x162   :  { %v1302_v25 = vadd.f32 %v1899_v16, %v1205_v19  ;;  %v1208_v26 = vadd.f32 %v1838_v21, %v2198_v30 }
 0x164   :  { %v1305_v29 = vadd.f32 %v1902_v24, %v1208_v26  ;;  %v1839_v31 = vpop.f32.mrb[36].mxu0  ;;  %v1511_v40 = vmul.f32 %v1434_v10, %v1302_v25 }
 0x165   :  { %v1903_v33 = vpop.f32.mrb[36].mxu1  ;;  %v1840_v34 = vpop.f32.mrb[37].mxu0 }
 0x166   :  { %v1841_v35 = vadd.f32 %v1840_v34, %v1839_v31  ;;  %v1904_v37 = vpop.f32.mrb[37].mxu1  ;;  %v1842_v39 = vpop.f32.mrb[38].mxu0  ;;  %1527 = vst [vmem:[#allocation7] sm:$0xff] %v1511_v40  ;;  %v1512_v48 = vmul.f32 %v1439_v32, %v1305_v29 }
 0x167   :  { %v1905_v41 = vadd.f32 %v1904_v37, %v1903_v33  ;;  %v1906_v43 = vpop.f32.mrb[38].mxu1  ;;  %v1843_v45 = vpop.f32.mrb[39].mxu0 }
 0x168   :  { %v1213_v28 = vadd.f32 %v1841_v35, %v2200_v42  ;;  %v1844_v46 = vadd.f32 %v1843_v45, %v1842_v39  ;;  %v1907_v47 = vpop.f32.mrb[39].mxu1  ;;  %1528 = vst [vmem:[#allocation7 + $0x8] sm:$0xff] %v1512_v48  ;;  %v1464_v34 = vpop.permute.xlu0 %1463 }
 0x169   :  { %v1908_v30 = vadd.f32 %v1907_v47, %v1906_v43  ;;  %v1469_v37 = vpop.permute.xlu1 %1468 }
 0x16a   :  { %v1310_v49 = vadd.f32 %v1905_v41, %v1213_v28  ;;  %v1216_v50 = vadd.f32 %v1844_v46, %v2202_v44 }
 0x16c   :  { %v1313_v51 = vadd.f32 %v1908_v30, %v1216_v50  ;;  %v1845_v53 = vpop.f32.mrb[40].mxu0  ;;  %v1513_v63 = vmul.f32 %v1444_v27, %v1310_v49 }
 0x16d   :  { %v1909_v57 = vpop.f32.mrb[40].mxu1  ;;  %v1846_v59 = vpop.f32.mrb[41].mxu0 }
 0x16e   :  { %v1847_v60 = vadd.f32 %v1846_v59, %v1845_v53  ;;  %v1910_v61 = vpop.f32.mrb[41].mxu1  ;;  %v1848_v62 = vpop.f32.mrb[42].mxu0  ;;  %1529 = vst [vmem:[#allocation7 + $0x10] sm:$0xff] %v1513_v63  ;;  %v1514_v9 = vmul.f32 %v1449_v55, %v1313_v51 }
 0x16f   :  { %v1911_v0 = vadd.f32 %v1910_v61, %v1909_v57  ;;  %v1912_v42 = vpop.f32.mrb[42].mxu1  ;;  %v1849_v1 = vpop.f32.mrb[43].mxu0 }
 0x170   :  { %v1221_v2 = vadd.f32 %v1847_v60, %v2204_v56  ;;  %v1850_v3 = vadd.f32 %v1849_v1, %v1848_v62  ;;  %v1913_v5 = vpop.f32.mrb[43].mxu1  ;;  %1530 = vst [vmem:[#allocation7 + $0x18] sm:$0xff] %v1514_v9  ;;  %v1474_v57 = vpop.permute.xlu0 %1473 }
 0x171   :  { %v1914_v44 = vadd.f32 %v1913_v5, %v1912_v42  ;;  %v1479_v60 = vpop.permute.xlu1 %1478 }
 0x172   :  { %v1318_v10 = vadd.f32 %v1911_v0, %v1221_v2  ;;  %v1224_v11 = vadd.f32 %v1850_v3, %v2206_v58 }
 0x174   :  { %v1321_v13 = vadd.f32 %v1914_v44, %v1224_v11  ;;  %v1851_v14 = vpop.f32.mrb[44].mxu0  ;;  %v1515_v23 = vmul.f32 %v1454_v12, %v1318_v10 }
 0x175   :  { %v1915_v16 = vpop.f32.mrb[44].mxu1  ;;  %v1852_v17 = vpop.f32.mrb[45].mxu0 }
 0x176   :  { %v1853_v18 = vadd.f32 %v1852_v17, %v1851_v14  ;;  %v1916_v19 = vpop.f32.mrb[45].mxu1  ;;  %v1854_v21 = vpop.f32.mrb[46].mxu0  ;;  %v1516_v31 = vmul.f32 %v1459_v15, %v1321_v13  ;;  %1531 = vst [vmem:[#allocation7 + $0x20] sm:$0xff] %v1515_v23 }
 0x177   :  { %v1917_v56 = vadd.f32 %v1916_v19, %v1915_v16  ;;  %v1918_v24 = vpop.f32.mrb[46].mxu1  ;;  %v1855_v25 = vpop.f32.mrb[47].mxu0 }
 0x178   :  { %v1229_v26 = vadd.f32 %v1853_v18, %v2208_v6  ;;  %v1856_v27 = vadd.f32 %v1855_v25, %v1854_v21  ;;  %v1919_v29 = vpop.f32.mrb[47].mxu1  ;;  %1532 = vst [vmem:[#allocation7 + $0x28] sm:$0xff] %v1516_v31  ;;  %v1484_v14 = vpop.permute.xlu0 %1483 }
 0x179   :  { %v1920_v58 = vadd.f32 %v1919_v29, %v1918_v24  ;;  %v1489_v15 = vpop.permute.xlu1 %1488 }
 0x17a   :  { %v1326_v32 = vadd.f32 %v1917_v56, %v1229_v26  ;;  %v1232_v33 = vadd.f32 %v1856_v27, %v2210_v8 }
 0x17c   :  { %v1329_v35 = vadd.f32 %v1920_v58, %v1232_v33  ;;  %v1857_v39 = vpop.f32.mrb[48].mxu0  ;;  %v1517_v43 = vmul.f32 %v1464_v34, %v1326_v32  ;;  %v1494_v34 = vpop.permute.xlu0 %1493 }
 0x17d   :  { %v1921_v40 = vpop.f32.mrb[48].mxu1  ;;  %v1858_v41 = vpop.f32.mrb[49].mxu0 }
 0x17e   :  { %v1859_v45 = vadd.f32 %v1858_v41, %v1857_v39  ;;  %v1922_v28 = vpop.f32.mrb[49].mxu1  ;;  %v1860_v46 = vpop.f32.mrb[50].mxu0  ;;  %v1518_v30 = vmul.f32 %v1469_v37, %v1329_v35  ;;  %1533 = vst [vmem:[#allocation7 + $0x30] sm:$0xff] %v1517_v43 }
 0x17f   :  { %v1923_v6 = vadd.f32 %v1922_v28, %v1921_v40  ;;  %v1924_v47 = vpop.f32.mrb[50].mxu1  ;;  %v1861_v48 = vpop.f32.mrb[51].mxu0 }
 0x180   :  { %v1237_v49 = vadd.f32 %v1859_v45, %v2212_v20  ;;  %v1862_v50 = vadd.f32 %v1861_v48, %v1860_v46  ;;  %v1925_v8 = vpop.f32.mrb[51].mxu1  ;;  %1534 = vst [vmem:[#allocation7 + $0x38] sm:$0xff] %v1518_v30  ;;  %v1499_v35 = vpop.permute.xlu1 %1498 }
 0x181   :  { %v1926_v51 = vadd.f32 %v1925_v8, %v1924_v47 }
 0x182   :  { %v1334_v53 = vadd.f32 %v1923_v6, %v1237_v49  ;;  %v1240_v55 = vadd.f32 %v1862_v50, %v2214_v22 }
 0x184   :  { %v1337_v59 = vadd.f32 %v1926_v51, %v1240_v55  ;;  %v1863_v61 = vpop.f32.mrb[52].mxu0  ;;  %v1519_v0 = vmul.f32 %v1474_v57, %v1334_v53  ;;  %v1504_v55 = vpop.permute.xlu0 %1503 }
 0x185   :  { %v1927_v62 = vpop.f32.mrb[52].mxu1  ;;  %v1864_v63 = vpop.f32.mrb[53].mxu0 }
 0x186   :  { %v1865_v42 = vadd.f32 %v1864_v63, %v1863_v61  ;;  %v1928_v1 = vpop.f32.mrb[53].mxu1  ;;  %v1866_v2 = vpop.f32.mrb[54].mxu0  ;;  %v1520_v9 = vmul.f32 %v1479_v60, %v1337_v59  ;;  %1535 = vst [vmem:[#allocation7 + $0x40] sm:$0xff] %v1519_v0 }
 0x187   :  { %v1929_v3 = vadd.f32 %v1928_v1, %v1927_v62  ;;  %v1930_v5 = vpop.f32.mrb[54].mxu1  ;;  %v1867_v20 = vpop.f32.mrb[55].mxu0 }
 0x188   :  { %v1245_v44 = vadd.f32 %v1865_v42, %v2216_v36  ;;  %v1868_v10 = vadd.f32 %v1867_v20, %v1866_v2  ;;  %v1931_v11 = vpop.f32.mrb[55].mxu1  ;;  %1536 = vst [vmem:[#allocation7 + $0x48] sm:$0xff] %v1520_v9  ;;  %v1509_v59 = vpop.permute.xlu1 %1508 }
 0x189   :  { %v1932_v22 = vadd.f32 %v1931_v11, %v1930_v5 }
 0x18a   :  { %v1342_v12 = vadd.f32 %v1929_v3, %v1245_v44  ;;  %v1248_v13 = vadd.f32 %v1868_v10, %v2218_v38 }
 0x18c   :  { %v1345_v16 = vadd.f32 %v1932_v22, %v1248_v13  ;;  %v1869_v17 = vpop.f32.mrb[56].mxu0  ;;  %v1521_v21 = vmul.f32 %v1484_v14, %v1342_v12 }
 0x18d   :  { %v1933_v18 = vpop.f32.mrb[56].mxu1  ;;  %v1870_v19 = vpop.f32.mrb[57].mxu0 }
 0x18e   :  { %v1871_v23 = vadd.f32 %v1870_v19, %v1869_v17  ;;  %v1934_v56 = vpop.f32.mrb[57].mxu1  ;;  %v1872_v24 = vpop.f32.mrb[58].mxu0  ;;  %1537 = vst [vmem:[#allocation7 + $0x50] sm:$0xff] %v1521_v21  ;;  %v1522_v27 = vmul.f32 %v1489_v15, %v1345_v16 }
 0x18f   :  { %v1935_v25 = vadd.f32 %v1934_v56, %v1933_v18  ;;  %v1936_v26 = vpop.f32.mrb[58].mxu1  ;;  %v1873_v36 = vpop.f32.mrb[59].mxu0 }
 0x190   :  { %v1253_v29 = vadd.f32 %v1871_v23, %v2220_v52  ;;  %v1874_v31 = vadd.f32 %v1873_v36, %v1872_v24  ;;  %v1937_v58 = vpop.f32.mrb[59].mxu1  ;;  %1538 = vst [vmem:[#allocation7 + $0x58] sm:$0xff] %v1522_v27 }
 0x191   :  { %v1938_v38 = vadd.f32 %v1937_v58, %v1936_v26 }
 0x192   :  { %v1350_v32 = vadd.f32 %v1935_v25, %v1253_v29  ;;  %v1256_v33 = vadd.f32 %v1874_v31, %v2222_v54 }
 0x194   :  { %v1353_v37 = vadd.f32 %v1938_v38, %v1256_v33  ;;  %v1875_v39 = vpop.f32.mrb[60].mxu0  ;;  %v1523_v43 = vmul.f32 %v1494_v34, %v1350_v32 }
 0x195   :  { %v1939_v40 = vpop.f32.mrb[60].mxu1  ;;  %v1876_v41 = vpop.f32.mrb[61].mxu0 }
 0x196   :  { %v1877_v45 = vadd.f32 %v1876_v41, %v1875_v39  ;;  %v1940_v28 = vpop.f32.mrb[61].mxu1  ;;  %v1878_v46 = vpop.f32.mrb[62].mxu0  ;;  %1539 = vst [vmem:[#allocation7 + $0x60] sm:$0xff] %v1523_v43  ;;  %v1524_v48 = vmul.f32 %v1499_v35, %v1353_v37 }
 0x197   :  { %v1941_v6 = vadd.f32 %v1940_v28, %v1939_v40  ;;  %v1942_v47 = vpop.f32.mrb[62].mxu1  ;;  %v1879_v52 = vpop.f32.mrb[63].mxu0 }
 0x198   :  { %v1261_v30 = vadd.f32 %v1877_v45, %v2224_v4  ;;  %v1880_v49 = vadd.f32 %v1879_v52, %v1878_v46  ;;  %v1943_v50 = vpop.f32.mrb[63].mxu1  ;;  %1540 = vst [vmem:[#allocation7 + $0x68] sm:$0xff] %v1524_v48 }
 0x199   :  { %v1944_v54 = vadd.f32 %v1943_v50, %v1942_v47 }
 0x19a   :  { %v1358_v8 = vadd.f32 %v1941_v6, %v1261_v30  ;;  %v1264_v51 = vadd.f32 %v1880_v49, %v2226_v7 }
 0x19c   :  { %v1361_v53 = vadd.f32 %v1944_v54, %v1264_v51  ;;  %v1525_v57 = vmul.f32 %v1504_v55, %v1358_v8 }
 0x19e   :  { %1541 = vst [vmem:[#allocation7 + $0x70] sm:$0xff] %v1525_v57  ;;  %v1526_v60 = vmul.f32 %v1509_v59, %v1361_v53 }
 0x1a0   :  { %1542 = vst [vmem:[#allocation7 + $0x78] sm:$0xff] %v1526_v60 }
 0x1a1   :  { %2077 = shalt.err (!%p2074_p6)
}
 0x1a2   :  { %s2078_s18 = scalar_lea.hbm %s2259_s3, 2048 }
 0x1a3   :  { %p2079_p7 = scmp.ne.s32.totalorder %s2259_s3, %s2078_s18  ;;  %p2082_p8 = scmp.lt.u32.totalorder %s2078_s18, %s2259_s3 }
 0x1a5   :  { %p2084_p9 = pnand %p2082_p8, %p2079_p7 }
 0x1a7   :  { %2087 = shalt.err (!%p2084_p9)
}
 0x1a8   :  { %s2102_s23 = smov 128   ;;  %s2103_s24 = smov 8  }
 0x1a9   :  { %1554 = dma.vmem_to_hbm [thread:$0]  %s1549_s14, 2048, %s2259_s3, [#allocation4], %s2102_s23, %s2102_s23, %s2103_s24  }
 0x1aa   :  { %2092 = dma.done.wait [#allocation4], 2048  }
 0x1ab   :  { %2093 = vsyncadd [#allocation4], 4294965248 }
 0x1ac   :  { %1558 = vsyncpa [#allocation3], 1 }
 0x1ad   :  { %1559 = vsyncpa [#allocation6], 1 }
 0x1ae   :  { %1560 = vsyncpa [#allocation4], 1 }

</bundles_post_ra>
